<compile_context>
chip_gen: v7x
topology: tpu7x:2x2x1
jax: 0.10.0
libtpu: 0.0.40
codegen_flags: <defaults>
</compile_context>

<pallas_src>
import jax
import jax.numpy as jnp
from jax import lax
from jax.experimental import pallas as pl
from jax.experimental.pallas import tpu as pltpu

EPS = 1e-5


def _convblock_kernel(p_ref, w_ref, o_ref):
    # p_ref: (N, K, HW)      bf16 im2col patches, already transposed per instance
    # w_ref: (C_out, K)      bf16 weight matrix
    # o_ref: (N, C_out, HW)  f32 output, lane-dense (HW on the lane axis)
    n, c_out, hw = o_ref.shape
    inv_hw = 1.0 / hw

    w = w_ref[...]                                            # (C_out, K) bf16

    # N is tiny and static -> unrolled; every iteration is fully lane-dense.
    for i in range(n):
        # Conv as MXU matmul: (C_out, K) @ (K, HW) -> (C_out, HW), f32 acc.
        y = jnp.dot(w, p_ref[i], preferred_element_type=jnp.float32)

        # InstanceNorm2d (affine=False, biased variance): single-pass
        # sum / sum-of-squares per channel (XLU cross-lane reductions).
        s = jnp.sum(y, axis=1, keepdims=True)                 # (C_out, 1)
        s2 = jnp.sum(y * y, axis=1, keepdims=True)            # (C_out, 1)
        mean = s * inv_hw
        var = jnp.maximum(s2 * inv_hw - mean * mean, 0.0)
        scale = lax.rsqrt(var + EPS)                          # EUP

        # Normalize + ReLU; store is full-width (256 lanes), no transpose.
        o_ref[i] = jnp.maximum((y - mean) * scale, 0.0).astype(o_ref.dtype)


def conv_block(x, weight, bias=None, *, stride=1, padding=1):
    """ConvBlock forward (down=True, use_act=True).

    x:      (N, C_in, H, W)   NCHW, float32
    weight: (C_out, C_in, KH, KW)
    bias:   (C_out,)  -- accepted for API parity but unused: InstanceNorm's
                         per-channel mean subtraction cancels it exactly.
    returns (N, C_out, H_out, W_out) float32
    """
    del bias  # cancelled exactly by InstanceNorm (affine=False)

    N, C_in, H, W = x.shape
    C_out, _, KH, KW = weight.shape

    # Reflect padding (PyTorch padding_mode='reflect'); bf16 halves HBM bytes.
    xb = x.astype(jnp.bfloat16)
    xp = jnp.pad(xb, ((0, 0), (0, 0), (padding, padding), (padding, padding)),
                 mode="reflect")
    Hp, Wp = H + 2 * padding, W + 2 * padding
    H_out = (Hp - KH) // stride + 1
    W_out = (Wp - KW) // stride + 1
    HW = H_out * W_out
    K = C_in * KH * KW

    # im2col, built directly in transposed (N, K, HW) layout.
    # K index = ci*KH*KW + kh*KW + kw  -- matches weight.reshape(C_out, K).
    taps = []
    for kh in range(KH):
        for kw in range(KW):
            taps.append(xp[:, :, kh:kh + H_out * stride:stride,
                              kw:kw + W_out * stride:stride])
    patches_t = jnp.stack(taps, axis=2).reshape(N, K, HW)        # (N, K, HW) bf16

    w_mat = weight.reshape(C_out, K).astype(jnp.bfloat16)        # (C_out, K) bf16

    out = pl.pallas_call(
        _convblock_kernel,
        out_shape=jax.ShapeDtypeStruct((N, C_out, HW), jnp.float32),
        grid_spec=pltpu.PrefetchScalarGridSpec(
            num_scalar_prefetch=0,
            grid=(1,),   # whole problem in one step (per-step overhead dominates at N=2)
            in_specs=[
                pl.BlockSpec((N, K, HW), lambda i: (0, 0, 0)),
                pl.BlockSpec((C_out, K), lambda i: (0, 0)),
            ],
            out_specs=pl.BlockSpec((N, C_out, HW), lambda i: (0, 0, 0)),
        ),
        compiler_params=pltpu.CompilerParams(
            dimension_semantics=("arbitrary",)),
    )(patches_t, w_mat)

    # Output is already channel-major: a reshape is enough (no transpose).
    return out.reshape(N, C_out, H_out, W_out)


def _reference(x, weight, bias, *, stride=1, padding=1):
    """Pure-JAX f32 reference (conv + bias + instance norm + relu)."""
    xp = jnp.pad(x, ((0, 0), (0, 0), (padding, padding), (padding, padding)),
                 mode="reflect")
    y = lax.conv_general_dilated(
        xp, weight, window_strides=(stride, stride), padding="VALID",
        dimension_numbers=("NCHW", "OIHW", "NCHW"))
    y = y + bias.reshape(1, -1, 1, 1)
    mean = jnp.mean(y, axis=(2, 3), keepdims=True)
    var = jnp.mean((y - mean) ** 2, axis=(2, 3), keepdims=True)
    y = (y - mean) / jnp.sqrt(var + EPS)
    return jnp.maximum(y, 0.0)


if __name__ == "__main__":
    key = jax.random.PRNGKey(0)
    k_x, k_w, k_b = jax.random.split(key, 3)

    # ConvBlock(in_channels=4, out_channels=8, down=True, use_act=True,
    #           kernel_size=3, stride=1, padding=1)
    N, C_in, H, W = 2, 4, 16, 16
    C_out, KH, KW = 8, 3, 3

    x = jax.random.normal(k_x, (N, C_in, H, W), dtype=jnp.float32)
    weight = jax.random.normal(k_w, (C_out, C_in, KH, KW), dtype=jnp.float32) * 0.1
    bias = jax.random.normal(k_b, (C_out,), dtype=jnp.float32) * 0.1

    out = conv_block(x, weight, bias, stride=1, padding=1)
    out = jax.block_until_ready(out)

    ref = _reference(x, weight, bias, stride=1, padding=1)
    assert out.shape == ref.shape == (N, C_out, H, W)
    # bf16 matmul inputs -> slightly looser tolerance than pure-f32.
    assert jnp.allclose(out, ref, rtol=2e-2, atol=2e-2), "mismatch vs reference"

    print("KERNEL_OK")
</pallas_src>

<mosaic_0001>
module attributes {stable_mosaic.version = 11 : i64} {
  func.func @_convblock_kernel(%arg0: i32, %arg1: memref<2x36x256xbf16, #tpu.memory_space<vmem>>, %arg2: memref<8x36xbf16, #tpu.memory_space<vmem>>, %arg3: memref<2x8x256xf32, #tpu.memory_space<vmem>>) attributes {dimension_semantics = [#tpu.dimension_semantics<arbitrary>], iteration_bounds = array<i64: 1>, scalar_prefetch = 0 : i64, scratch_operands = 0 : i64, tpu.core_type = #tpu.core_type<tc>, window_params = [{pipeline_mode = #tpu.pipeline_mode<synchronous>, transform_indices = @transform_0, window_bounds = array<i64: 2, 36, 256>}, {pipeline_mode = #tpu.pipeline_mode<synchronous>, transform_indices = @transform_1, window_bounds = array<i64: 8, 36>}, {pipeline_mode = #tpu.pipeline_mode<synchronous>, transform_indices = @transform_2, window_bounds = array<i64: 2, 8, 256>}]} {
    %c0 = arith.constant 0 : index
    %c0_0 = arith.constant 0 : index
    %0 = vector.load %arg2[%c0, %c0_0] : memref<8x36xbf16, #tpu.memory_space<vmem>>, vector<8x36xbf16>
    %c0_1 = arith.constant 0 : index
    %c0_2 = arith.constant 0 : index
    %c0_3 = arith.constant 0 : index
    %1 = vector.load %arg1[%c0_1, %c0_2, %c0_3] : memref<2x36x256xbf16, #tpu.memory_space<vmem>>, vector<1x36x256xbf16>
    %2 = vector.shape_cast %1 : vector<1x36x256xbf16> to vector<36x256xbf16>
    %cst = arith.constant dense<0.000000e+00> : vector<8x256xf32>
    %3 = tpu.matmul %0, %2, %cst {dimension_numbers = #tpu.dot_dimension_numbers<[1], [0], [0], [1], [0, 0, 1, 1], [], []>} : vector<8x36xbf16>, vector<36x256xbf16>, vector<8x256xf32> -> vector<8x256xf32>
    %cst_4 = arith.constant dense<0.000000e+00> : vector<8xf32>
    %4 = vector.multi_reduction <add>, %3, %cst_4 [1] : vector<8x256xf32> to vector<8xf32>
    %5 = vector.shape_cast %4 : vector<8xf32> to vector<8x1xf32>
    %6 = arith.mulf %3, %3 : vector<8x256xf32>
    %cst_5 = arith.constant dense<0.000000e+00> : vector<8xf32>
    %7 = vector.multi_reduction <add>, %6, %cst_5 [1] : vector<8x256xf32> to vector<8xf32>
    %8 = vector.shape_cast %7 : vector<8xf32> to vector<8x1xf32>
    %cst_6 = arith.constant 3.906250e-03 : f32
    %9 = vector.broadcast %cst_6 : f32 to vector<8x1xf32>
    %10 = arith.mulf %5, %9 : vector<8x1xf32>
    %cst_7 = arith.constant 3.906250e-03 : f32
    %11 = vector.broadcast %cst_7 : f32 to vector<8x1xf32>
    %12 = arith.mulf %8, %11 : vector<8x1xf32>
    %13 = arith.mulf %10, %10 : vector<8x1xf32>
    %14 = arith.subf %12, %13 : vector<8x1xf32>
    %cst_8 = arith.constant 0.000000e+00 : f32
    %15 = vector.broadcast %cst_8 : f32 to vector<8x1xf32>
    %16 = arith.maximumf %14, %15 : vector<8x1xf32>
    %cst_9 = arith.constant 9.99999974E-6 : f32
    %17 = vector.broadcast %cst_9 : f32 to vector<8x1xf32>
    %18 = arith.addf %16, %17 : vector<8x1xf32>
    %19 = math.rsqrt %18 : vector<8x1xf32>
    %20 = vector.broadcast %10 : vector<8x1xf32> to vector<8x256xf32>
    %21 = arith.subf %3, %20 : vector<8x256xf32>
    %22 = vector.broadcast %19 : vector<8x1xf32> to vector<8x256xf32>
    %23 = arith.mulf %21, %22 : vector<8x256xf32>
    %cst_10 = arith.constant 0.000000e+00 : f32
    %24 = vector.broadcast %cst_10 : f32 to vector<8x256xf32>
    %25 = arith.maximumf %23, %24 : vector<8x256xf32>
    %c0_11 = arith.constant 0 : index
    %c0_12 = arith.constant 0 : index
    %c0_13 = arith.constant 0 : index
    %26 = vector.load %arg3[%c0_11, %c0_12, %c0_13] : memref<2x8x256xf32, #tpu.memory_space<vmem>>, vector<1x8x256xf32>
    %27 = vector.shape_cast %26 : vector<1x8x256xf32> to vector<8x256xf32>
    %28 = vector.shape_cast %25 : vector<8x256xf32> to vector<1x8x256xf32>
    tpu.vector_store %arg3[%c0_11, %c0_12, %c0_13], %28 {strides = array<i32>} : memref<2x8x256xf32, #tpu.memory_space<vmem>>, vector<1x8x256xf32>,
    %c1 = arith.constant 1 : index
    %c0_14 = arith.constant 0 : index
    %c0_15 = arith.constant 0 : index
    %29 = vector.load %arg1[%c1, %c0_14, %c0_15] : memref<2x36x256xbf16, #tpu.memory_space<vmem>>, vector<1x36x256xbf16>
    %30 = vector.shape_cast %29 : vector<1x36x256xbf16> to vector<36x256xbf16>
    %cst_16 = arith.constant dense<0.000000e+00> : vector<8x256xf32>
    %31 = tpu.matmul %0, %30, %cst_16 {dimension_numbers = #tpu.dot_dimension_numbers<[1], [0], [0], [1], [0, 0, 1, 1], [], []>} : vector<8x36xbf16>, vector<36x256xbf16>, vector<8x256xf32> -> vector<8x256xf32>
    %cst_17 = arith.constant dense<0.000000e+00> : vector<8xf32>
    %32 = vector.multi_reduction <add>, %31, %cst_17 [1] : vector<8x256xf32> to vector<8xf32>
    %33 = vector.shape_cast %32 : vector<8xf32> to vector<8x1xf32>
    %34 = arith.mulf %31, %31 : vector<8x256xf32>
    %cst_18 = arith.constant dense<0.000000e+00> : vector<8xf32>
    %35 = vector.multi_reduction <add>, %34, %cst_18 [1] : vector<8x256xf32> to vector<8xf32>
    %36 = vector.shape_cast %35 : vector<8xf32> to vector<8x1xf32>
    %cst_19 = arith.constant 3.906250e-03 : f32
    %37 = vector.broadcast %cst_19 : f32 to vector<8x1xf32>
    %38 = arith.mulf %33, %37 : vector<8x1xf32>
    %cst_20 = arith.constant 3.906250e-03 : f32
    %39 = vector.broadcast %cst_20 : f32 to vector<8x1xf32>
    %40 = arith.mulf %36, %39 : vector<8x1xf32>
    %41 = arith.mulf %38, %38 : vector<8x1xf32>
    %42 = arith.subf %40, %41 : vector<8x1xf32>
    %cst_21 = arith.constant 0.000000e+00 : f32
    %43 = vector.broadcast %cst_21 : f32 to vector<8x1xf32>
    %44 = arith.maximumf %42, %43 : vector<8x1xf32>
    %cst_22 = arith.constant 9.99999974E-6 : f32
    %45 = vector.broadcast %cst_22 : f32 to vector<8x1xf32>
    %46 = arith.addf %44, %45 : vector<8x1xf32>
    %47 = math.rsqrt %46 : vector<8x1xf32>
    %48 = vector.broadcast %38 : vector<8x1xf32> to vector<8x256xf32>
    %49 = arith.subf %31, %48 : vector<8x256xf32>
    %50 = vector.broadcast %47 : vector<8x1xf32> to vector<8x256xf32>
    %51 = arith.mulf %49, %50 : vector<8x256xf32>
    %cst_23 = arith.constant 0.000000e+00 : f32
    %52 = vector.broadcast %cst_23 : f32 to vector<8x256xf32>
    %53 = arith.maximumf %51, %52 : vector<8x256xf32>
    %c1_24 = arith.constant 1 : index
    %c0_25 = arith.constant 0 : index
    %c0_26 = arith.constant 0 : index
    %54 = vector.load %arg3[%c1_24, %c0_25, %c0_26] : memref<2x8x256xf32, #tpu.memory_space<vmem>>, vector<1x8x256xf32>
    %55 = vector.shape_cast %54 : vector<1x8x256xf32> to vector<8x256xf32>
    %56 = vector.shape_cast %53 : vector<8x256xf32> to vector<1x8x256xf32>
    tpu.vector_store %arg3[%c1_24, %c0_25, %c0_26], %56 {strides = array<i32>} : memref<2x8x256xf32, #tpu.memory_space<vmem>>, vector<1x8x256xf32>,
    return
  }
  func.func @transform_0(%arg0: i32) -> (i32, i32, i32) {
    %c0_i32 = arith.constant 0 : i32
    %c0_i32_0 = arith.constant 0 : i32
    %c0_i32_1 = arith.constant 0 : i32
    %c0_i32_2 = arith.constant 0 : i32
    return %c0_i32, %c0_i32_0, %c0_i32_1 : i32, i32, i32
  }
  func.func @transform_1(%arg0: i32) -> (i32, i32) {
    %c0_i32 = arith.constant 0 : i32
    %c0_i32_0 = arith.constant 0 : i32
    %c0_i32_1 = arith.constant 0 : i32
    return %c0_i32, %c0_i32_0 : i32, i32
  }
  func.func @transform_2(%arg0: i32) -> (i32, i32, i32) {
    %c0_i32 = arith.constant 0 : i32
    %c0_i32_0 = arith.constant 0 : i32
    %c0_i32_1 = arith.constant 0 : i32
    %c0_i32_2 = arith.constant 0 : i32
    return %c0_i32, %c0_i32_0, %c0_i32_1 : i32, i32, i32
  }
}

</mosaic_0001>

<bundles_post_ra>
// kernel: tpu_custom_call.1
= control target key start
LH: loop header
LB: loop body
LE: loop exit
PB: predicated region body
PF: predicated region fallthrough
CT: control target
= control target key end

     0   :  { %v306_v2 = vmov 0   ;;  %vm48_vm0 = vcmask 1041408   ;;  %s374_s0 = inlined_call_operand.vmem [shape: bf16[2,36,256], index: 0, kind: input, shape index: {}]   ;;  %s375_s1 = inlined_call_operand.vmem [shape: bf16[8,36], index: 1, kind: input, shape index: {}]   ;;  %s376_s2 = inlined_call_operand.hbm [shape: f32[2,8,256], index: 2, kind: output, shape index: {}]  }
   0x1   :  { %v262_v0 = vld [vmem:[%s374_s0 + $0x4] ss:$8 sps:$4 sm:$0xff]   ;;  %v264_v1 = vld [vmem:[%s374_s0] ss:$8 sps:$4 sm:$0xff]   ;;  %87 = vmatprep.mubr.bf16.mxu0 %v306_v2  ;;  %188 = vmatprep.mubr.bf16.mxu1 %v306_v2  ;;  %v268_v5 = vld [vmem:[%s374_s0 + $0x14] ss:$8 sps:$4 sm:$0xff]  }
   0x2   :  { %55 = vmatprep.subr.bf16.mxu0 %v262_v0  ;;  %v265_v3 = vld [vmem:[%s374_s0 + $0x2c] ss:$8 sps:$4 sm:$0xff]   ;;  %v267_v4 = vld [vmem:[%s374_s0 + $0x28] ss:$8 sps:$4 sm:$0xff]   ;;  %v271_v7 = vld [vmem:[%s374_s0 + $0x3c] ss:$8 sps:$4 sm:$0xff]  }
   0x3   :  { %56 = vmatpush1.bf16.msra.mxu0 %v264_v1  ;;  %v270_v6 = vld [vmem:[%s374_s0 + $0x10] ss:$8 sps:$4 sm:$0xff]   ;;  %156 = vmatprep.subr.bf16.mxu1 %v265_v3  ;;  %v18_v9 = vld [vmem:[%s374_s0 + $0x20] sm:$0x33]  ;;  %v249_v10 = vld [vmem:[%s374_s0 + $0x48] sm:$0x33] }
   0x4   :  { %157 = vmatpush1.bf16.msra.mxu1 %v267_v4  ;;  %57 = vmatprep.subr.bf16.mxu0 %v268_v5  ;;  %v273_v8 = vld [vmem:[%s374_s0 + $0x38] ss:$8 sps:$4 sm:$0xff]   ;;  %v242_v11 = vcombine.high %v18_v9, %v18_v9  ;;  %v241_v12 = vcombine.low %v18_v9, %v18_v9  ;;  %v255_v13 = vcombine.high %v249_v10, %v249_v10 }
   0x5   :  { %158 = vmatprep.subr.bf16.mxu1 %v271_v7  ;;  %v254_v14 = vcombine.low %v249_v10, %v249_v10 }
   0x6   :  { %7 = vsyncpa [#allocation3], 0  ;;  %v50_v15 = vsel %vm48_vm0, %v241_v12, 0  ;;  %v13_v17 = vld [vmem:[%s375_s1] sm:$0xf]  ;;  %vm44_vm1 = vcmask 293888  }
   0x7   :  { %58 = vmatpush1.bf16.msra.mxu0 %v270_v6  ;;  %v151_v16 = vsel %vm48_vm0, %v254_v14, 0  ;;  %s307_s0 = smov [#allocation2]  }
   0x8   :  { %243 = vmatprep.subr.msk.bf16.mxu0 %vm48_vm0, %v242_v11  ;;  %159 = vmatpush1.bf16.msra.mxu1 %v273_v8  ;;  %s226_s1 = sshll.u32 %s307_s0, 4  ;;  %s227_s1 = int_to_ptr.vmem [resolvable:$true] %s226_s1 }
   0x9   :  { %256 = vmatprep.subr.msk.bf16.mxu1 %vm48_vm0, %v255_v13  ;;  %s282_s3 = scalar_lea.vmem %s227_s1, 512  ;;  %p287_p1 = scmp.lt.s32.totalorder %s227_s1, %s227_s1 }
   0xa   :  { %p283_p0 = scmp.ne.s32.totalorder %s227_s1, %s282_s3  ;;  %p288_p2 = scmp.lt.s32.totalorder %s282_s3, %s282_s3 }
   0xb   :  { %60 = vmatpush1.bf16.msra.mxu0 %v50_v15 }
   0xc   :  { %161 = vmatpush1.bf16.msra.mxu1 %v151_v16  ;;  %p289_p3 = por %p288_p2, %p287_p1 }
   0xe   :  { %244 = vmatmul.mubr.msk.bf16.vlgmr.msra.gmra.mrb[0].mxu0 %vm44_vm1, %v13_v17  ;;  %p290_p4 = pnand %p289_p3, %p283_p0 }
   0xf   :  { %257 = vmatmul.mubr.msk.bf16.vlgmr.msra.gmra.mrb[0].mxu1 %vm44_vm1, %v13_v17 }
  0xe1   :  { %v89_v18 = vpop.f32.mrb[0].mxu0 }
  0xe2   :  { %v91_v19 = vpop.f32.mrb[1].mxu0  ;;  %v99_v20 = vmul.f32 %v89_v18, %v89_v18  ;;  %v190_v21 = vpop.f32.mrb[0].mxu1 }
  0xe3   :  { %v93_v22 = vpop.f32.mrb[2].mxu0  ;;  %v96_v23 = vadd.f32 %v91_v19, %v89_v18  ;;  %v100_v24 = vmul.f32 %v91_v19, %v91_v19  ;;  %v192_v25 = vpop.f32.mrb[1].mxu1  ;;  %v200_v27 = vmul.f32 %v190_v21, %v190_v21 }
  0xe4   :  { %v94_v26 = vpop.f32.mrb[3].mxu0  ;;  %v194_v28 = vpop.f32.mrb[2].mxu1  ;;  %v197_v30 = vadd.f32 %v192_v25, %v190_v21  ;;  %v201_v31 = vmul.f32 %v192_v25, %v192_v25 }
  0xe5   :  { %97 = vadd.xlane.f32.xlu0 %v96_v23  ;;  %v101_v29 = vadd.f32 %v100_v24, %v99_v20  ;;  %v195_v32 = vpop.f32.mrb[3].mxu1 }
  0xe6   :  { %v202_v33 = vadd.f32 %v201_v31, %v200_v27 }
  0xe7   :  { %102 = vadd.xlane.f32.xlu1 %v101_v29 }
  0xe9   :  { %198 = vadd.xlane.f32.xlu0 %v197_v30 }
  0xeb   :  { %203 = vadd.xlane.f32.xlu1 %v202_v33 }
 0x172   :  { %v98_v34 = vpop.xlane.xlu0 %97 }
 0x173   :  { %v104_v35 = vmul.f32 0.00390625, %v98_v34 }
 0x174   :  { %v103_v36 = vpop.xlane.xlu1 %102 }
 0x175   :  { %v105_v37 = vmul.f32 0.00390625, %v103_v36  ;;  %v106_v38 = vmul.f32 %v104_v35, %v104_v35  ;;  %v111_v50 = vsub.f32 %v89_v18, %v104_v35  ;;  %v112_v51 = vsub.f32 %v91_v19, %v104_v35 }
 0x176   :  { %v199_v39 = vpop.xlane.xlu0 %198 }
 0x177   :  { %v107_v40 = vsub.f32 %v105_v37, %v106_v38  ;;  %v205_v41 = vmul.f32 0.00390625, %v199_v39 }
 0x178   :  { %v204_v42 = vpop.xlane.xlu1 %203 }
 0x179   :  { %v108_v43 = vmax.f32 %v107_v40, 0.0  ;;  %v206_v44 = vmul.f32 0.00390625, %v204_v42  ;;  %v207_v45 = vmul.f32 %v205_v41, %v205_v41  ;;  %v212_v57 = vsub.f32 %v190_v21, %v205_v41 }
 0x17a   :  { %v213_v58 = vsub.f32 %v192_v25, %v205_v41 }
 0x17b   :  { %v109_v46 = vadd.f32 1e-05, %v108_v43  ;;  %v208_v47 = vsub.f32 %v206_v44, %v207_v45 }
 0x17d   :  { %278 = vrsqrt.f32 %v109_v46  ;;  %v209_v48 = vmax.f32 %v208_v47, 0.0 }
 0x17f   :  { %v210_v49 = vadd.f32 1e-05, %v209_v48 }
 0x181   :  { %280 = vrsqrt.f32 %v210_v49 }
 0x187   :  { %v279_v52 = vpop.eup %278 }
 0x188   :  { %v113_v53 = vmul.f32 %v279_v52, %v111_v50  ;;  %v114_v54 = vmul.f32 %v279_v52, %v112_v51 }
 0x18a   :  { %v115_v55 = vmax.f32 %v113_v53, 0.0  ;;  %v116_v56 = vmax.f32 %v114_v54, 0.0 }
 0x18b   :  { %v281_v59 = vpop.eup %280 }
 0x18c   :  { %117 = vst [vmem:[#allocation2] sm:$0xff] %v115_v55  ;;  %118 = vst [vmem:[#allocation2 + $0x8] sm:$0xff] %v116_v56  ;;  %v214_v60 = vmul.f32 %v281_v59, %v212_v57  ;;  %v215_v61 = vmul.f32 %v281_v59, %v213_v58 }
 0x18e   :  { %v216_v62 = vmax.f32 %v214_v60, 0.0  ;;  %v217_v63 = vmax.f32 %v215_v61, 0.0 }
 0x190   :  { %219 = vst [vmem:[#allocation2 + $0x10] sm:$0xff] %v216_v62  ;;  %220 = vst [vmem:[#allocation2 + $0x18] sm:$0xff] %v217_v63 }
 0x191   :  { %293 = shalt.err (!%p290_p4)
}
 0x192   :  { %s294_s6 = scalar_lea.hbm %s376_s2, 512 }
 0x193   :  { %p295_p5 = scmp.ne.s32.totalorder %s376_s2, %s294_s6  ;;  %p298_p6 = scmp.lt.u32.totalorder %s294_s6, %s376_s2 }
 0x195   :  { %p300_p7 = pnand %p298_p6, %p295_p5 }
 0x197   :  { %303 = shalt.err (!%p300_p7)
}
 0x198   :  { %s308_s11 = smov 256   ;;  %s309_s12 = smov 16  }
 0x199   :  { %232 = dma.vmem_to_hbm [thread:$0]  %s227_s1, 512, %s376_s2, [#allocation3], %s308_s11, %s308_s11, %s309_s12  }
 0x19a   :  { %304 = dma.done.wait [#allocation3], 512  }
 0x19b   :  { %305 = vsyncadd [#allocation3], 4294966784 }
 0x19c   :  { %236 = vsyncpa [#allocation3], 1 }

</bundles_post_ra>
